<compile_context>
chip_gen: v6e
topology: v6e:2x2x1
jax: 0.10.0
libtpu: 0.0.40
codegen_flags: <defaults>
</compile_context>

<pallas_src>
import numpy as np
import jax
import jax.numpy as jnp
from jax.experimental import pallas as pl
from jax.experimental.pallas import tpu as pltpu


# ----------------------------- configuration -----------------------------
DIM = 2
END_FILTS = 32                       # cf.end_filts (in_channels)
POOL_SIZE = 4                        # cf.pool_size
PYRAMID_LEVELS = [0, 1, 2]           # cf.pyramid_levels
HEAD_CLASSES = 2                     # cf.head_classes
RG_N_FEATS = 2                       # cf.regression_n_features

HIDDEN = END_FILTS * 4                               # 128
K1 = END_FILTS * POOL_SIZE * POOL_SIZE               # conv1 "fan-in" = C*ps*ps = 512
D_BBOX = HEAD_CLASSES * 2 * DIM                      # 8
D_CLS = HEAD_CLASSES                                 # 2
D_RGR = HEAD_CLASSES * RG_N_FEATS                    # 4
D_HEAD = D_BBOX + D_CLS + D_RGR                      # 14 (fused head width)
D_HEAD_PAD = 128                                     # lane-dense fused output

MAX_TR = 1024                                        # max roi rows per grid step


# ------------------------------ Pallas kernel -----------------------------
def _classifier_head_kernel(p_ref, w1_ref, b1_ref, w2_ref, b2_ref,
                            wh_ref, bh_ref, out_ref):
    # conv1: ks == pool_size on a pool_size x pool_size input -> fully
    # connected; bf16 operands, f32 accumulation, f32 bias + ReLU.
    h1 = jnp.dot(p_ref[...], w1_ref[...],
                 preferred_element_type=jnp.float32) + b1_ref[...]
    h1 = jnp.maximum(h1, 0.0).astype(jnp.bfloat16)
    # conv2: 1x1 conv on 1x1 spatial map -> fully connected.
    h2 = jnp.dot(h1, w2_ref[...],
                 preferred_element_type=jnp.float32) + b2_ref[...]
    h2 = jnp.maximum(h2, 0.0).astype(jnp.bfloat16)
    # fused heads (bbox | class | regressor | zero-pad) -> one lane-dense
    # bf16 store (halves output HBM traffic vs f32).
    out_ref[...] = (jnp.dot(h2, wh_ref[...],
                            preferred_element_type=jnp.float32)
                    + bh_ref[...]).astype(out_ref.dtype)


def _choose_tiling(n_rois):
    """Pick (tile_rows, padded_rows).

    R <= 128: single grid step, rows padded only to a multiple of 16 (bf16
      sublane packing; block == full padded array so the (8,128) rule holds).
    R > 128: >= 2 grid steps so v7x can shard the 'parallel' axis across its
      two TensorCores; tiles are multiples of 128 rows, capped at MAX_TR to
      keep per-step overhead amortized on single-TC v5e/v6e.
    """
    if n_rois <= 128:
        tr = ((n_rois + 15) // 16) * 16
        return tr, tr
    r128 = ((n_rois + 127) // 128) * 128
    tr = min(MAX_TR, ((r128 // 2 + 127) // 128) * 128)
    r_pad = ((n_rois + tr - 1) // tr) * tr
    return tr, r_pad


def classifier_head_pallas(pooled_flat, params):
    """pooled_flat: (R, K1) bfloat16. Returns (bbox, class_logits, regress) f32."""
    R = pooled_flat.shape[0]
    if R == 0:                                        # no proposals: skip kernel
        return [jnp.zeros((0, HEAD_CLASSES, 2 * DIM), jnp.float32),
                jnp.zeros((0, HEAD_CLASSES), jnp.float32),
                jnp.zeros((0, HEAD_CLASSES, RG_N_FEATS), jnp.float32)]

    TR, R_pad = _choose_tiling(R)

    # row-pad the already-bf16 activations (no separate f32->bf16 HBM pass)
    p = jnp.pad(pooled_flat.astype(jnp.bfloat16), ((0, R_pad - R), (0, 0)))

    # pre-transpose weights to (in, out) so the kernel does plain row x col matmuls
    w1t = params["w1"].T.astype(jnp.bfloat16)            # (K1, HIDDEN)
    w2t = params["w2"].T.astype(jnp.bfloat16)            # (HIDDEN, HIDDEN)
    # fused head weight: (HIDDEN, D_BBOX + D_CLS + D_RGR) zero-padded to 128 lanes
    wh = jnp.concatenate(
        [params["wb"].T, params["wc"].T, params["wr"].T], axis=1)   # (HIDDEN, 14)
    wh = jnp.pad(wh, ((0, 0), (0, D_HEAD_PAD - D_HEAD))).astype(jnp.bfloat16)
    b1 = params["b1"].reshape(1, HIDDEN).astype(jnp.float32)
    b2 = params["b2"].reshape(1, HIDDEN).astype(jnp.float32)
    bh = jnp.concatenate([params["bb"], params["bc"], params["br"]])  # (14,)
    bh = jnp.pad(bh, (0, D_HEAD_PAD - D_HEAD)).reshape(1, D_HEAD_PAD).astype(jnp.float32)

    grid = (R_pad // TR,)
    const = lambda i: (0, 0)
    # Constant-index weight/bias blocks are DMA'd once (Pallas skips re-fetch
    # when the block index does not change across grid steps).
    in_specs = [
        pl.BlockSpec((TR, K1), lambda i: (i, 0)),
        pl.BlockSpec((K1, HIDDEN), const), pl.BlockSpec((1, HIDDEN), const),
        pl.BlockSpec((HIDDEN, HIDDEN), const), pl.BlockSpec((1, HIDDEN), const),
        pl.BlockSpec((HIDDEN, D_HEAD_PAD), const), pl.BlockSpec((1, D_HEAD_PAD), const),
    ]
    out_specs = pl.BlockSpec((TR, D_HEAD_PAD), lambda i: (i, 0))
    out_shape = jax.ShapeDtypeStruct((R_pad, D_HEAD_PAD), jnp.bfloat16)

    flops = 2 * R_pad * (K1 * HIDDEN + HIDDEN * HIDDEN + HIDDEN * D_HEAD_PAD)
    bytes_accessed = (R_pad * K1 * 2                       # bf16 activations in
                      + (K1 * HIDDEN + HIDDEN * HIDDEN + HIDDEN * D_HEAD_PAD) * 2
                      + (2 * HIDDEN + D_HEAD_PAD) * 4      # f32 biases
                      + R_pad * D_HEAD_PAD * 2)            # bf16 output
    cost = pl.CostEstimate(flops=flops, transcendentals=0,
                           bytes_accessed=bytes_accessed)

    out = pl.pallas_call(
        _classifier_head_kernel,
        grid_spec=pltpu.PrefetchScalarGridSpec(
            num_scalar_prefetch=0, grid=grid,
            in_specs=in_specs, out_specs=out_specs),
        out_shape=out_shape,
        cost_estimate=cost,
        compiler_params=pltpu.CompilerParams(
            dimension_semantics=("parallel",)),
    )(p, w1t, b1, w2t, b2, wh, bh)

    # slice the R valid rows / 14 valid columns, back to f32 for downstream use
    out = out[:R].astype(jnp.float32)
    bbox = out[:, :D_BBOX].reshape(R, -1, 2 * DIM)          # (R, head_classes, 2*dim)
    cls = out[:, D_BBOX:D_BBOX + D_CLS]                     # (R, head_classes)
    regr = out[:, D_BBOX + D_CLS:D_HEAD].reshape(R, -1, RG_N_FEATS)
    return [bbox, cls, regr]


# --------------------- pyramid ROI-align (plain-JAX glue) ------------------
def _roi_align_level(fm, batch_ix, boxes, pool_size):
    """Bilinear ROI-align of normalized boxes on one NCHW feature map.

    Interpolation runs in f32; the result is emitted in bf16 so the pooled
    activations feeding the Pallas head never take a separate cast pass.
    """
    B, C, H, W = fm.shape
    y1, x1, y2, x2 = boxes[:, 0], boxes[:, 1], boxes[:, 2], boxes[:, 3]
    y1p, y2p = y1 * (H - 1), y2 * (H - 1)
    x1p, x2p = x1 * (W - 1), x2 * (W - 1)
    bin_h = (y2p - y1p) / pool_size
    bin_w = (x2p - x1p) / pool_size
    centers = jnp.arange(pool_size, dtype=jnp.float32) + 0.5
    ys = y1p[:, None] + bin_h[:, None] * centers[None, :]          # (R, P)
    xs = x1p[:, None] + bin_w[:, None] * centers[None, :]          # (R, P)
    R = boxes.shape[0]
    yy = jnp.broadcast_to(ys[:, :, None], (R, pool_size, pool_size))
    xx = jnp.broadcast_to(xs[:, None, :], (R, pool_size, pool_size))

    y0 = jnp.floor(yy); x0 = jnp.floor(xx)
    ly = yy - y0; lx = xx - x0
    y0i = jnp.clip(y0.astype(jnp.int32), 0, H - 1)
    y1i = jnp.clip(y0i + 1, 0, H - 1)
    x0i = jnp.clip(x0.astype(jnp.int32), 0, W - 1)
    x1i = jnp.clip(x0i + 1, 0, W - 1)
    bix = batch_ix[:, None, None]

    def g(yi, xi):
        return fm[bix, :, yi, xi]                                   # (R, P, P, C)

    v = (g(y0i, x0i) * ((1 - ly) * (1 - lx))[..., None]
         + g(y0i, x1i) * ((1 - ly) * lx)[..., None]
         + g(y1i, x0i) * (ly * (1 - lx))[..., None]
         + g(y1i, x1i) * (ly * lx)[..., None])
    return jnp.transpose(v, (0, 3, 1, 2)).astype(jnp.bfloat16)      # (R, C, P, P)


def pyramid_roi_align(feature_maps, rois, pool_size, pyramid_levels, dim):
    # TODO(synk): torchvision-style sampling_ratio averaging is approximated
    # with a single bilinear sample at each bin center.
    # TODO(synk): the level formula (4 + log2(sqrt(h*w)) on normalized coords,
    # then clip) approximates RegRCNN's image-size-scaled assignment.
    # TODO(synk): all pyramid levels are computed for every ROI and selected
    # with jnp.where; a Pallas scalar-prefetch/manual-DMA gather (P2/P4) or
    # per-level ROI partitioning would remove the redundant work and is where
    # most remaining end-to-end time lives for realistic feature-map sizes.
    boxes = rois[:, :2 * dim]
    batch_ix = rois[:, 2 * dim].astype(jnp.int32)
    h = boxes[:, 2] - boxes[:, 0]
    w = boxes[:, 3] - boxes[:, 1]
    roi_level = jnp.round(4.0 + jnp.log2(jnp.sqrt(h * w) + 1e-8)).astype(jnp.int32)
    roi_level = jnp.clip(roi_level, min(pyramid_levels), max(pyramid_levels))
    lvl_idx = roi_level - min(pyramid_levels)

    out = _roi_align_level(feature_maps[0], batch_ix, boxes, pool_size)
    for l in range(1, len(feature_maps)):
        lvl_out = _roi_align_level(feature_maps[l], batch_ix, boxes, pool_size)
        sel = (lvl_idx == l)[:, None, None, None]
        out = jnp.where(sel, lvl_out, out)
    return out                                                       # (R, C, P, P) bf16


# ------------------------------ parameters --------------------------------
def init_params(key):
    ks = jax.random.split(key, 10)
    s = 0.05
    return {
        # conv1 weight (out=4C, in=C, ps, ps) flattened over (in, y, x) -> (HIDDEN, K1)
        "w1": s * jax.random.normal(ks[0], (HIDDEN, K1), jnp.float32),
        "b1": s * jax.random.normal(ks[1], (HIDDEN,), jnp.float32),
        # conv2 1x1: (HIDDEN, HIDDEN)
        "w2": s * jax.random.normal(ks[2], (HIDDEN, HIDDEN), jnp.float32),
        "b2": s * jax.random.normal(ks[3], (HIDDEN,), jnp.float32),
        # linear heads (PyTorch Linear: weight (out, in))
        "wb": s * jax.random.normal(ks[4], (D_BBOX, HIDDEN), jnp.float32),
        "bb": s * jax.random.normal(ks[5], (D_BBOX,), jnp.float32),
        "wc": s * jax.random.normal(ks[6], (D_CLS, HIDDEN), jnp.float32),
        "bc": s * jax.random.normal(ks[7], (D_CLS,), jnp.float32),
        "wr": s * jax.random.normal(ks[8], (D_RGR, HIDDEN), jnp.float32),
        "br": s * jax.random.normal(ks[9], (D_RGR,), jnp.float32),
    }


def classifier_forward(feature_maps, rois, params):
    pooled = pyramid_roi_align(feature_maps, rois, POOL_SIZE, PYRAMID_LEVELS, DIM)
    pooled_flat = pooled.reshape(pooled.shape[0], -1)               # (R, C*ps*ps) bf16
    return classifier_head_pallas(pooled_flat, params)


# pure-JAX reference of the fused head, mirroring the kernel's bf16/f32 math
def _head_reference(pooled_flat, p):
    x = pooled_flat.astype(jnp.bfloat16)
    w1t = p["w1"].T.astype(jnp.bfloat16)
    w2t = p["w2"].T.astype(jnp.bfloat16)
    h1 = jnp.maximum(jnp.dot(x, w1t, preferred_element_type=jnp.float32)
                     + p["b1"], 0.0).astype(jnp.bfloat16)
    h2 = jnp.maximum(jnp.dot(h1, w2t, preferred_element_type=jnp.float32)
                     + p["b2"], 0.0).astype(jnp.bfloat16)
    def head(w, b):
        return jnp.dot(h2, w.T.astype(jnp.bfloat16),
                       preferred_element_type=jnp.float32) + b
    bbox = head(p["wb"], p["bb"]).reshape(h2.shape[0], -1, 2 * DIM)
    cls = head(p["wc"], p["bc"])
    regr = head(p["wr"], p["br"]).reshape(h2.shape[0], -1, RG_N_FEATS)
    return bbox, cls, regr


# --------------------------------- main ------------------------------------
if __name__ == "__main__":
    key = jax.random.PRNGKey(0)
    k_fm, k_roi, k_par = jax.random.split(key, 3)

    B = 2
    # FPN feature maps, NCHW, one per pyramid level: 16x16, 8x8, 4x4
    fm_keys = jax.random.split(k_fm, len(PYRAMID_LEVELS))
    feature_maps = [
        jax.random.normal(fm_keys[l], (B, END_FILTS, 16 // (2 ** l), 16 // (2 ** l)),
                          jnp.float32)
        for l in range(len(PYRAMID_LEVELS))
    ]

    # rois: (n_proposals, y1, x1, y2, x2, batch_ix), normalized coords
    n_rois = 10
    kr1, kr2, kr3 = jax.random.split(k_roi, 3)
    tl = jax.random.uniform(kr1, (n_rois, 2), minval=0.0, maxval=0.55)
    sz = jax.random.uniform(kr2, (n_rois, 2), minval=0.1, maxval=0.4)
    br_ = jnp.minimum(tl + sz, 0.99)
    bix = jax.random.randint(kr3, (n_rois,), 0, B).astype(jnp.float32)
    rois = jnp.concatenate(
        [tl[:, :1], tl[:, 1:], br_[:, :1], br_[:, 1:], bix[:, None]], axis=1)

    params = init_params(k_par)

    bbox, cls_logits, regress = classifier_forward(feature_maps, rois, params)
    jax.block_until_ready((bbox, cls_logits, regress))

    # sanity-check the Pallas head against a plain-JAX reference (same bf16 math);
    # kernel output is bf16-stored, so tolerances absorb one extra bf16 rounding.
    pooled = pyramid_roi_align(feature_maps, rois, POOL_SIZE, PYRAMID_LEVELS, DIM)
    rb, rc, rr = _head_reference(pooled.reshape(n_rois, -1), params)
    assert bbox.shape == (n_rois, HEAD_CLASSES, 2 * DIM)
    assert cls_logits.shape == (n_rois, HEAD_CLASSES)
    assert regress.shape == (n_rois, HEAD_CLASSES, RG_N_FEATS)
    np.testing.assert_allclose(np.asarray(bbox), np.asarray(rb), rtol=2e-2, atol=2e-2)
    np.testing.assert_allclose(np.asarray(cls_logits), np.asarray(rc), rtol=2e-2, atol=2e-2)
    np.testing.assert_allclose(np.asarray(regress), np.asarray(rr), rtol=2e-2, atol=2e-2)

    print("KERNEL_OK")
</pallas_src>

<mosaic_0001>
module attributes {stable_mosaic.version = 11 : i64} {
  func.func @_classifier_head_kernel(%arg0: i32, %arg1: memref<16x512xbf16, #tpu.memory_space<vmem>>, %arg2: memref<512x128xbf16, #tpu.memory_space<vmem>>, %arg3: memref<1x128xf32, #tpu.memory_space<vmem>>, %arg4: memref<128x128xbf16, #tpu.memory_space<vmem>>, %arg5: memref<1x128xf32, #tpu.memory_space<vmem>>, %arg6: memref<128x128xbf16, #tpu.memory_space<vmem>>, %arg7: memref<1x128xf32, #tpu.memory_space<vmem>>, %arg8: memref<16x128xbf16, #tpu.memory_space<vmem>>) attributes {dimension_semantics = [#tpu.dimension_semantics<parallel>], iteration_bounds = array<i64: 1>, scalar_prefetch = 0 : i64, scratch_operands = 0 : i64, tpu.core_type = #tpu.core_type<tc>, window_params = [{transform_indices = @transform_0, window_bounds = array<i64: 16, 512>}, {pipeline_mode = #tpu.pipeline_mode<synchronous>, transform_indices = @transform_1, window_bounds = array<i64: 512, 128>}, {pipeline_mode = #tpu.pipeline_mode<synchronous>, transform_indices = @transform_2, window_bounds = array<i64: 1, 128>}, {pipeline_mode = #tpu.pipeline_mode<synchronous>, transform_indices = @transform_3, window_bounds = array<i64: 128, 128>}, {pipeline_mode = #tpu.pipeline_mode<synchronous>, transform_indices = @transform_4, window_bounds = array<i64: 1, 128>}, {pipeline_mode = #tpu.pipeline_mode<synchronous>, transform_indices = @transform_5, window_bounds = array<i64: 128, 128>}, {pipeline_mode = #tpu.pipeline_mode<synchronous>, transform_indices = @transform_6, window_bounds = array<i64: 1, 128>}, {transform_indices = @transform_7, window_bounds = array<i64: 16, 128>}]} {
    %c0 = arith.constant 0 : index
    %c0_0 = arith.constant 0 : index
    %0 = vector.load %arg1[%c0, %c0_0] : memref<16x512xbf16, #tpu.memory_space<vmem>>, vector<16x512xbf16>
    %c0_1 = arith.constant 0 : index
    %c0_2 = arith.constant 0 : index
    %1 = vector.load %arg2[%c0_1, %c0_2] : memref<512x128xbf16, #tpu.memory_space<vmem>>, vector<512x128xbf16>
    %cst = arith.constant dense<0.000000e+00> : vector<16x128xf32>
    %2 = tpu.matmul %0, %1, %cst {dimension_numbers = #tpu.dot_dimension_numbers<[1], [0], [0], [1], [0, 0, 1, 1], [], []>} : vector<16x512xbf16>, vector<512x128xbf16>, vector<16x128xf32> -> vector<16x128xf32>
    %c0_3 = arith.constant 0 : index
    %c0_4 = arith.constant 0 : index
    %3 = vector.load %arg3[%c0_3, %c0_4] : memref<1x128xf32, #tpu.memory_space<vmem>>, vector<1x128xf32>
    %4 = vector.broadcast %3 : vector<1x128xf32> to vector<16x128xf32>
    %5 = arith.addf %2, %4 : vector<16x128xf32>
    %cst_5 = arith.constant 0.000000e+00 : f32
    %6 = vector.broadcast %cst_5 : f32 to vector<16x128xf32>
    %7 = arith.maximumf %5, %6 : vector<16x128xf32>
    %8 = arith.truncf %7 : vector<16x128xf32> to vector<16x128xbf16>
    %c0_6 = arith.constant 0 : index
    %c0_7 = arith.constant 0 : index
    %9 = vector.load %arg4[%c0_6, %c0_7] : memref<128x128xbf16, #tpu.memory_space<vmem>>, vector<128x128xbf16>
    %cst_8 = arith.constant dense<0.000000e+00> : vector<16x128xf32>
    %10 = tpu.matmul %8, %9, %cst_8 {dimension_numbers = #tpu.dot_dimension_numbers<[1], [0], [0], [1], [0, 0, 1, 1], [], []>} : vector<16x128xbf16>, vector<128x128xbf16>, vector<16x128xf32> -> vector<16x128xf32>
    %c0_9 = arith.constant 0 : index
    %c0_10 = arith.constant 0 : index
    %11 = vector.load %arg5[%c0_9, %c0_10] : memref<1x128xf32, #tpu.memory_space<vmem>>, vector<1x128xf32>
    %12 = vector.broadcast %11 : vector<1x128xf32> to vector<16x128xf32>
    %13 = arith.addf %10, %12 : vector<16x128xf32>
    %cst_11 = arith.constant 0.000000e+00 : f32
    %14 = vector.broadcast %cst_11 : f32 to vector<16x128xf32>
    %15 = arith.maximumf %13, %14 : vector<16x128xf32>
    %16 = arith.truncf %15 : vector<16x128xf32> to vector<16x128xbf16>
    %c0_12 = arith.constant 0 : index
    %c0_13 = arith.constant 0 : index
    %17 = vector.load %arg6[%c0_12, %c0_13] : memref<128x128xbf16, #tpu.memory_space<vmem>>, vector<128x128xbf16>
    %cst_14 = arith.constant dense<0.000000e+00> : vector<16x128xf32>
    %18 = tpu.matmul %16, %17, %cst_14 {dimension_numbers = #tpu.dot_dimension_numbers<[1], [0], [0], [1], [0, 0, 1, 1], [], []>} : vector<16x128xbf16>, vector<128x128xbf16>, vector<16x128xf32> -> vector<16x128xf32>
    %c0_15 = arith.constant 0 : index
    %c0_16 = arith.constant 0 : index
    %19 = vector.load %arg7[%c0_15, %c0_16] : memref<1x128xf32, #tpu.memory_space<vmem>>, vector<1x128xf32>
    %20 = vector.broadcast %19 : vector<1x128xf32> to vector<16x128xf32>
    %21 = arith.addf %18, %20 : vector<16x128xf32>
    %22 = arith.truncf %21 : vector<16x128xf32> to vector<16x128xbf16>
    %c0_17 = arith.constant 0 : index
    %c0_18 = arith.constant 0 : index
    %23 = vector.load %arg8[%c0_17, %c0_18] : memref<16x128xbf16, #tpu.memory_space<vmem>>, vector<16x128xbf16>
    tpu.vector_store %arg8[%c0_17, %c0_18], %22 {strides = array<i32>} : memref<16x128xbf16, #tpu.memory_space<vmem>>, vector<16x128xbf16>,
    return
  }
  func.func @transform_0(%arg0: i32) -> (i32, i32) {
    %c0_i32 = arith.constant 0 : i32
    %c0_i32_0 = arith.constant 0 : i32
    return %arg0, %c0_i32 : i32, i32
  }
  func.func @transform_1(%arg0: i32) -> (i32, i32) {
    %c0_i32 = arith.constant 0 : i32
    %c0_i32_0 = arith.constant 0 : i32
    %c0_i32_1 = arith.constant 0 : i32
    return %c0_i32, %c0_i32_0 : i32, i32
  }
  func.func @transform_2(%arg0: i32) -> (i32, i32) {
    %c0_i32 = arith.constant 0 : i32
    %c0_i32_0 = arith.constant 0 : i32
    %c0_i32_1 = arith.constant 0 : i32
    return %c0_i32, %c0_i32_0 : i32, i32
  }
  func.func @transform_3(%arg0: i32) -> (i32, i32) {
    %c0_i32 = arith.constant 0 : i32
    %c0_i32_0 = arith.constant 0 : i32
    %c0_i32_1 = arith.constant 0 : i32
    return %c0_i32, %c0_i32_0 : i32, i32
  }
  func.func @transform_4(%arg0: i32) -> (i32, i32) {
    %c0_i32 = arith.constant 0 : i32
    %c0_i32_0 = arith.constant 0 : i32
    %c0_i32_1 = arith.constant 0 : i32
    return %c0_i32, %c0_i32_0 : i32, i32
  }
  func.func @transform_5(%arg0: i32) -> (i32, i32) {
    %c0_i32 = arith.constant 0 : i32
    %c0_i32_0 = arith.constant 0 : i32
    %c0_i32_1 = arith.constant 0 : i32
    return %c0_i32, %c0_i32_0 : i32, i32
  }
  func.func @transform_6(%arg0: i32) -> (i32, i32) {
    %c0_i32 = arith.constant 0 : i32
    %c0_i32_0 = arith.constant 0 : i32
    %c0_i32_1 = arith.constant 0 : i32
    return %c0_i32, %c0_i32_0 : i32, i32
  }
  func.func @transform_7(%arg0: i32) -> (i32, i32) {
    %c0_i32 = arith.constant 0 : i32
    %c0_i32_0 = arith.constant 0 : i32
    return %arg0, %c0_i32 : i32, i32
  }
}

</mosaic_0001>

<bundles_post_ra>
// kernel: tpu_custom_call.1
= control target key start
LH: loop header
LB: loop body
LE: loop exit
PB: predicated region body
PF: predicated region fallthrough
CT: control target
= control target key end

     0   :  { %12 = vsyncpa [#allocation3], 0  ;;  %s1155_s0 = inlined_call_operand.hbm [shape: bf16[16,512], index: 0, kind: input, shape index: {}]   ;;  %s1156_s1 = inlined_call_operand.hbm [shape: bf16[512,128], index: 1, kind: input, shape index: {}]   ;;  %s1157_s2 = inlined_call_operand.vmem [shape: f32[1,128], index: 2, kind: input, shape index: {}]   ;;  %s1158_s3 = inlined_call_operand.hbm [shape: bf16[128,128], index: 3, kind: input, shape index: {}]   ;;  %s1159_s4 = inlined_call_operand.vmem [shape: f32[1,128], index: 4, kind: input, shape index: {}]   ;;  %s1160_s5 = inlined_call_operand.hbm [shape: bf16[128,128], index: 5, kind: input, shape index: {}]   ;;  %s1161_s6 = inlined_call_operand.vmem [shape: f32[1,128], index: 6, kind: input, shape index: {}]   ;;  %s1162_s7 = inlined_call_operand.hbm [shape: bf16[16,128], index: 7, kind: output, shape index: {}]  }
   0x1   :  { %13 = vsyncpa [#allocation6], 0 }
   0x2   :  { %14 = vsyncpa [#allocation9], 0 }
   0x3   :  { %15 = vsyncpa [#allocation4], 0  ;;  %s1050_s24 = smov [#allocation5]  }
   0x4   :  { %s33_s25 = sshll.u32 %s1050_s24, 4  ;;  %s34_s25 = int_to_ptr.vmem [resolvable:$true] %s33_s25 }
   0x5   :  { %s950_s26 = scalar_lea.vmem %s34_s25, 4096  ;;  %p955_p1 = scmp.lt.s32.totalorder %s34_s25, %s34_s25 }
   0x6   :  { %p951_p0 = scmp.ne.s32.totalorder %s34_s25, %s950_s26  ;;  %p956_p2 = scmp.lt.s32.totalorder %s950_s26, %s950_s26 }
   0x8   :  { %p957_p3 = por %p956_p2, %p955_p1 }
   0xa   :  { %p958_p4 = pnand %p957_p3, %p951_p0 }
   0xc   :  { %961 = shalt.err (!%p958_p4)
}
   0xd   :  { %s1051_s27 = smov 64   ;;  %s1052_s28 = smov 4  }
   0xe   :  { %39 = dma.hbm_to_vmem [thread:$0]  %s1156_s1, 4096, %s34_s25, [#allocation6], %s1051_s27, %s1051_s27, %s1052_s28  }
   0xf   :  { %s1053_s8 = smov [#allocation2]  }
  0x10   :  { %s21_s9 = sshll.u32 %s1053_s8, 4  ;;  %s22_s9 = int_to_ptr.vmem [resolvable:$true] %s21_s9 }
  0x11   :  { %s970_s10 = scalar_lea.vmem %s22_s9, 512  ;;  %p975_p6 = scmp.lt.s32.totalorder %s22_s9, %s22_s9 }
  0x12   :  { %p971_p5 = scmp.ne.s32.totalorder %s22_s9, %s970_s10  ;;  %p976_p7 = scmp.lt.s32.totalorder %s970_s10, %s970_s10 }
  0x14   :  { %p977_p8 = por %p976_p7, %p975_p6 }
  0x16   :  { %p978_p9 = pnand %p977_p8, %p971_p5 }
  0x18   :  { %981 = shalt.err (!%p978_p9)
}
  0x19   :  { %s1054_s11 = smov 256   ;;  %s1055_s12 = smov 16  }
  0x1a   :  { %27 = dma.hbm_to_vmem [thread:$0]  %s1155_s0, 512, %s22_s9, [#allocation3], %s1054_s11, %s1054_s11, %s1055_s12  }
  0x1b   :  { %s1056_s15 = smov [#allocation7]   ;;  %s1057_s17 = smov [#allocation8]  }
  0x1c   :  { %s47_s16 = sshll.u32 %s1056_s15, 4  ;;  %s61_s1 = sshll.u32 %s1057_s17, 4  ;;  %s48_s16 = int_to_ptr.vmem [resolvable:$true] %s47_s16  ;;  %s62_s1 = int_to_ptr.vmem [resolvable:$true] %s61_s1 }
  0x1d   :  { %s990_s18 = scalar_lea.vmem %s48_s16, 1024  ;;  %p995_p11 = scmp.lt.s32.totalorder %s48_s16, %s48_s16 }
  0x1e   :  { %p991_p10 = scmp.ne.s32.totalorder %s48_s16, %s990_s18  ;;  %p996_p12 = scmp.lt.s32.totalorder %s990_s18, %s990_s18 }
  0x20   :  { %p997_p13 = por %p996_p12, %p995_p11 }
  0x22   :  { %p998_p0 = pnand %p997_p13, %p991_p10 }
  0x24   :  { %1001 = shalt.err (!%p998_p0)
}
  0x25   :  { %53 = dma.hbm_to_vmem [thread:$0]  %s1158_s3, 1024, %s48_s16, [#allocation6], %s1051_s27, %s1051_s27, %s1052_s28  }
  0x26   :  { %s1010_s0 = scalar_lea.vmem %s62_s1, 1024  ;;  %p1015_p2 = scmp.lt.s32.totalorder %s62_s1, %s62_s1 }
  0x27   :  { %p1011_p1 = scmp.ne.s32.totalorder %s62_s1, %s1010_s0  ;;  %p1016_p3 = scmp.lt.s32.totalorder %s1010_s0, %s1010_s0 }
  0x29   :  { %p1017_p4 = por %p1016_p3, %p1015_p2 }
  0x2b   :  { %p1018_p5 = pnand %p1017_p4, %p1011_p1 }
  0x2d   :  { %1021 = shalt.err (!%p1018_p5)
}
  0x2e   :  { %67 = dma.hbm_to_vmem [thread:$0]  %s1160_s5, 1024, %s62_s1, [#allocation9], %s1051_s27, %s1051_s27, %s1052_s28  }
  0x2f   :  { %1042 = dma.done.wait [#allocation3], 512  }
  0x30   :  { %1043 = vsyncadd [#allocation3], 4294966784 }
  0x31   :  { %1044 = dma.done.wait [#allocation6], 5120  }
  0x32   :  { %1045 = vsyncadd [#allocation6], 4294962176 }
  0x33   :  { %1046 = dma.done.wait [#allocation9], 1024  }
  0x34   :  { %1047 = vsyncadd [#allocation9], 4294966272  ;;  %v888_v0 = vld [vmem:[#allocation5 + $0x78] sm:$0xff]   ;;  %v892_v4 = vld [vmem:[#allocation5 + $0x70] sm:$0xff]   ;;  %v1058_v34 = vmov 0.0   ;;  %vm1059_vm0 = vmmov 0  }
  0x35   :  { %v889_v1 = vld [vmem:[#allocation5 + $0xf8] sm:$0xff]   ;;  %775 = vmatprep.subr.bf16.mxu0 %v888_v0  ;;  %v893_v5 = vld [vmem:[#allocation5 + $0xf0] sm:$0xff]   ;;  %v896_v8 = vld [vmem:[#allocation5 + $0x68] sm:$0xff]   ;;  %s1060_s26 = smov [#allocation10]  }
  0x36   :  { %v890_v2 = vld [vmem:[#allocation5 + $0x38] sm:$0xff]   ;;  %797 = vmatprep.subr.bf16.mxu1 %v889_v1  ;;  %v894_v6 = vld [vmem:[#allocation5 + $0x30] sm:$0xff]   ;;  %v897_v9 = vld [vmem:[#allocation5 + $0xe8] sm:$0xff]   ;;  %s697_s29 = sshll.u32 %s1060_s26, 4  ;;  %s698_s29 = int_to_ptr.vmem [resolvable:$true] %s697_s29 }
  0x37   :  { %v891_v3 = vld [vmem:[#allocation5 + $0xb8] sm:$0xff]   ;;  %776 = vmatpush3.bf16.msra.mxu0 %v890_v2  ;;  %v895_v7 = vld [vmem:[#allocation5 + $0xb0] sm:$0xff]   ;;  %v898_v10 = vld [vmem:[#allocation5 + $0x28] sm:$0xff]   ;;  %p1027_p7 = scmp.lt.s32.totalorder %s698_s29, %s698_s29 }
  0x38   :  { %798 = vmatpush3.bf16.msra.mxu1 %v891_v3  ;;  %777 = vmatprep.subr.bf16.mxu0 %v892_v4  ;;  %v899_v11 = vld [vmem:[#allocation5 + $0xa8] sm:$0xff]   ;;  %v900_v12 = vld [vmem:[#allocation5 + $0x60] sm:$0xff]   ;;  %v904_v16 = vld [vmem:[#allocation5 + $0x58] sm:$0xff]  }
  0x39   :  { %799 = vmatprep.subr.bf16.mxu1 %v893_v5  ;;  %v901_v13 = vld [vmem:[#allocation5 + $0xe0] sm:$0xff]   ;;  %v905_v17 = vld [vmem:[#allocation5 + $0xd8] sm:$0xff]   ;;  %v908_v20 = vld [vmem:[#allocation5 + $0x50] sm:$0xff]  }
  0x3a   :  { %v902_v14 = vld [vmem:[#allocation5 + $0x20] sm:$0xff]   ;;  %v906_v18 = vld [vmem:[#allocation5 + $0x18] sm:$0xff]   ;;  %v909_v21 = vld [vmem:[#allocation5 + $0xd0] sm:$0xff]  }
  0x3b   :  { %778 = vmatpush3.bf16.msra.mxu0 %v894_v6  ;;  %v903_v15 = vld [vmem:[#allocation5 + $0xa0] sm:$0xff]   ;;  %v907_v19 = vld [vmem:[#allocation5 + $0x98] sm:$0xff]   ;;  %v910_v22 = vld [vmem:[#allocation5 + $0x10] sm:$0xff]  }
  0x3c   :  { %800 = vmatpush3.bf16.msra.mxu1 %v895_v7  ;;  %779 = vmatprep.subr.bf16.mxu0 %v896_v8  ;;  %v911_v23 = vld [vmem:[#allocation5 + $0x90] sm:$0xff]   ;;  %v912_v24 = vld [vmem:[#allocation5 + $0x48] sm:$0xff]   ;;  %v916_v28 = vld [vmem:[#allocation5 + $0x40] sm:$0xff]  }
  0x3d   :  { %801 = vmatprep.subr.bf16.mxu1 %v897_v9  ;;  %v913_v25 = vld [vmem:[#allocation5 + $0xc8] sm:$0xff]   ;;  %v917_v29 = vld [vmem:[#allocation5 + $0xc0] sm:$0xff]   ;;  %v926_v37 = vld [vmem:[#allocation7 + $0x38] sm:$0xff]  }
  0x3e   :  { %v914_v26 = vld [vmem:[#allocation5 + $0x8] sm:$0xff]   ;;  %v918_v30 = vld [vmem:[#allocation5] sm:$0xff]   ;;  %v927_v38 = vld [vmem:[#allocation7 + $0x30] sm:$0xff]  }
  0x3f   :  { %780 = vmatpush3.bf16.msra.mxu0 %v898_v10  ;;  %v915_v27 = vld [vmem:[#allocation5 + $0x88] sm:$0xff]   ;;  %v919_v31 = vld [vmem:[#allocation5 + $0x80] sm:$0xff]   ;;  %v930_v41 = vld [vmem:[#allocation7 + $0x18] sm:$0xff]  }
  0x40   :  { %802 = vmatpush3.bf16.msra.mxu1 %v899_v11  ;;  %781 = vmatprep.subr.bf16.mxu0 %v900_v12  ;;  %v920_v32 = vld [vmem:[#allocation2] ss:$16 sps:$4 sm:$0xff]   ;;  %v922_v33 = vld [vmem:[#allocation2 + $0x4] ss:$16 sps:$4 sm:$0xff]   ;;  %v923_v35 = vld [vmem:[#allocation2 + $0x8] ss:$16 sps:$4 sm:$0xff]  }
  0x41   :  { %803 = vmatprep.subr.bf16.mxu1 %v901_v13  ;;  %v925_v36 = vld [vmem:[#allocation2 + $0xc] ss:$16 sps:$4 sm:$0xff]   ;;  %402 = vmatprep.mubr.bf16.mxu0 %v922_v33  ;;  %v929_v40 = vld [vmem:[#allocation7 + $0x20] sm:$0xff]   ;;  %v931_v42 = vld [vmem:[#allocation7 + $0x10] sm:$0xff]  }
  0x42   :  { %443 = vmatprep.mubr.bf16.mxu1 %v925_v36  ;;  %v928_v39 = vld [vmem:[#allocation7 + $0x28] sm:$0xff]   ;;  %v933_v44 = vld [vmem:[#allocation7] sm:$0xff]   ;;  %v934_v45 = vld [vmem:[#allocation8 + $0x38] sm:$0xff]  }
  0x43   :  { %782 = vmatpush3.bf16.msra.mxu0 %v902_v14  ;;  %v932_v43 = vld [vmem:[#allocation7 + $0x8] sm:$0xff]   ;;  %v935_v46 = vld [vmem:[#allocation8 + $0x30] sm:$0xff]   ;;  %v937_v48 = vld [vmem:[#allocation8 + $0x20] sm:$0xff]  }
  0x44   :  { %804 = vmatpush3.bf16.msra.mxu1 %v903_v15  ;;  %783 = vmatprep.subr.bf16.mxu0 %v904_v16  ;;  %v936_v47 = vld [vmem:[#allocation8 + $0x28] sm:$0xff]   ;;  %v938_v49 = vld [vmem:[#allocation8 + $0x18] sm:$0xff]   ;;  %v711_v52 = vld [vmem:[%s1157_s2] ss:$0 sm:$0xff] }
  0x45   :  { %805 = vmatprep.subr.bf16.mxu1 %v905_v17  ;;  %v939_v6 = vld [vmem:[#allocation8 + $0x10] sm:$0xff]   ;;  %v940_v7 = vld [vmem:[#allocation8 + $0x8] sm:$0xff]   ;;  %v941_v8 = vld [vmem:[#allocation8] sm:$0xff]  }
  0x46   :  { %v748_v9 = vld [vmem:[%s1159_s4] ss:$0 sm:$0xff]  ;;  %s1022_s4 = scalar_lea.vmem %s698_s29, 128 }
  0x47   :  { %784 = vmatpush3.bf16.msra.mxu0 %v906_v18  ;;  %p1023_p6 = scmp.ne.s32.totalorder %s698_s29, %s1022_s4  ;;  %p1028_p8 = scmp.lt.s32.totalorder %s1022_s4, %s1022_s4 }
  0x48   :  { %806 = vmatpush3.bf16.msra.mxu1 %v907_v19  ;;  %785 = vmatprep.subr.bf16.mxu0 %v908_v20  ;;  %v757_v20 = vld [vmem:[%s1161_s6] ss:$0 sm:$0xff] }
  0x49   :  { %807 = vmatprep.subr.bf16.mxu1 %v909_v21  ;;  %p1029_p9 = por %p1028_p8, %p1027_p7 }
  0x4b   :  { %786 = vmatpush3.bf16.msra.mxu0 %v910_v22  ;;  %p1030_p10 = pnand %p1029_p9, %p1023_p6 }
  0x4c   :  { %808 = vmatpush3.bf16.msra.mxu1 %v911_v23  ;;  %787 = vmatprep.subr.bf16.mxu0 %v912_v24 }
  0x4d   :  { %809 = vmatprep.subr.bf16.mxu1 %v913_v25 }
  0x4f   :  { %788 = vmatpush3.bf16.msra.mxu0 %v914_v26 }
  0x50   :  { %810 = vmatpush3.bf16.msra.mxu1 %v915_v27  ;;  %789 = vmatprep.subr.bf16.mxu0 %v916_v28 }
  0x51   :  { %811 = vmatprep.subr.bf16.mxu1 %v917_v29 }
  0x53   :  { %790 = vmatpush3.bf16.msra.mxu0 %v918_v30 }
  0x54   :  { %812 = vmatpush3.bf16.msra.mxu1 %v919_v31  ;;  %837 = vmatprep.subr.bf16.mxu0 %v1058_v34 }
  0x55   :  { %857 = vmatprep.subr.bf16.mxu1 %v1058_v34 }
  0x56   :  { %403 = vmatmul.mubr.bf16.vlgmr.msra.gmra.mxu0 %v920_v32 }
  0x57   :  { %444 = vmatmul.mubr.bf16.vlgmr.msra.gmra.mxu1 %v923_v35  ;;  %838 = vmatpush3.bf16.msra.mxu0 %v926_v37 }
  0x58   :  { %839 = vmatprep.subr.bf16.mxu0 %v1058_v34  ;;  %853 = vmatprep.mubr.msk.bf16.mxu0 %vm1059_vm0, %v1058_v34 }
  0x59   :  { %873 = vmatprep.mubr.msk.bf16.mxu1 %vm1059_vm0, %v1058_v34  ;;  %858 = vmatpush3.bf16.msra.mxu1 %v934_v45 }
  0x5a   :  { %859 = vmatprep.subr.bf16.mxu1 %v1058_v34 }
  0x5b   :  { %840 = vmatpush3.bf16.msra.mxu0 %v927_v38 }
  0x5c   :  { %841 = vmatprep.subr.bf16.mxu0 %v1058_v34 }
  0x5d   :  { %860 = vmatpush3.bf16.msra.mxu1 %v935_v46 }
  0x5e   :  { %861 = vmatprep.subr.bf16.mxu1 %v1058_v34 }
  0x5f   :  { %842 = vmatpush3.bf16.msra.mxu0 %v928_v39 }
  0x60   :  { %843 = vmatprep.subr.bf16.mxu0 %v1058_v34 }
  0x61   :  { %862 = vmatpush3.bf16.msra.mxu1 %v936_v47 }
  0x62   :  { %863 = vmatprep.subr.bf16.mxu1 %v1058_v34 }
  0x63   :  { %844 = vmatpush3.bf16.msra.mxu0 %v929_v40 }
  0x64   :  { %845 = vmatprep.subr.bf16.mxu0 %v1058_v34 }
  0x65   :  { %864 = vmatpush3.bf16.msra.mxu1 %v937_v48 }
  0x66   :  { %865 = vmatprep.subr.bf16.mxu1 %v1058_v34 }
  0x67   :  { %846 = vmatpush3.bf16.msra.mxu0 %v930_v41 }
  0x68   :  { %847 = vmatprep.subr.bf16.mxu0 %v1058_v34 }
  0x69   :  { %866 = vmatpush3.bf16.msra.mxu1 %v938_v49 }
  0x6a   :  { %867 = vmatprep.subr.bf16.mxu1 %v1058_v34 }
  0x6b   :  { %848 = vmatpush3.bf16.msra.mxu0 %v931_v42 }
  0x6c   :  { %849 = vmatprep.subr.bf16.mxu0 %v1058_v34 }
  0x6d   :  { %868 = vmatpush3.bf16.msra.mxu1 %v939_v6 }
  0x6e   :  { %869 = vmatprep.subr.bf16.mxu1 %v1058_v34 }
  0x6f   :  { %850 = vmatpush3.bf16.msra.mxu0 %v932_v43 }
  0x70   :  { %851 = vmatprep.subr.bf16.mxu0 %v1058_v34 }
  0x71   :  { %870 = vmatpush3.bf16.msra.mxu1 %v940_v7 }
  0x72   :  { %871 = vmatprep.subr.bf16.mxu1 %v1058_v34 }
  0x73   :  { %852 = vmatpush3.bf16.msra.mxu0 %v933_v44 }
  0x75   :  { %872 = vmatpush3.bf16.msra.mxu1 %v941_v8 }
 0x116   :  { %v791_v50 = vpop.f32.mrf.mxu0 }
 0x117   :  { %v813_v51 = vpop.f32.mrf.mxu1 }
 0x118   :  { %v792_v53 = vpop.f32.mrf.mxu0 }
 0x119   :  { %v793_v54 = vadd.f32 %v792_v53, %v791_v50  ;;  %v814_v55 = vpop.f32.mrf.mxu1 }
 0x11a   :  { %v794_v56 = vpop.f32.mrf.mxu0  ;;  %v815_v60 = vadd.f32 %v814_v55, %v813_v51 }
 0x11b   :  { %v405_v57 = vadd.f32 %v793_v54, %v711_v52  ;;  %v816_v58 = vpop.f32.mrf.mxu1 }
 0x11c   :  { %v795_v59 = vpop.f32.mrf.mxu0 }
 0x11d   :  { %v796_v61 = vadd.f32 %v795_v59, %v794_v56  ;;  %v817_v62 = vpop.f32.mrf.mxu1  ;;  %v446_v63 = vadd.f32 %v815_v60, %v405_v57 }
 0x11e   :  { %v818_v1 = vadd.f32 %v817_v62, %v816_v58 }
 0x11f   :  { %v408_v0 = vadd.f32 %v796_v61, %v711_v52  ;;  %v452_v3 = vmax.f32 %v446_v63, 0.0 }
 0x121   :  { %v449_v2 = vadd.f32 %v818_v1, %v408_v0 }
 0x123   :  { %v453_v4 = vmax.f32 %v449_v2, 0.0 }
 0x125   :  { %v454_v5 = vpack.c.bf16 %v453_v4, %v452_v3 }
 0x127   :  { %854 = vmatmul.mubr.bf16.vlgmr.msra.gmra.mxu0 %v454_v5 }
 0x1e7   :  { %v560_v10 = vpop.f32.mrf.mxu0 }
 0x1e8   :  { %v561_v12 = vadd.f32 %v748_v9, %v560_v10 }
 0x1e9   :  { %v855_v11 = vpop.f32.mrf.mxu0 }
 0x1ea   :  { %v567_v16 = vmax.f32 %v561_v12, 0.0 }
 0x1eb   :  { %v563_v13 = vpop.f32.mrf.mxu0 }
 0x1ec   :  { %v564_v14 = vadd.f32 %v748_v9, %v563_v13 }
 0x1ed   :  { %v856_v15 = vpop.f32.mrf.mxu0 }
 0x1ee   :  { %v568_v17 = vmax.f32 %v564_v14, 0.0 }
 0x1f0   :  { %v569_v18 = vpack.c.bf16 %v568_v17, %v567_v16 }
 0x1f2   :  { %874 = vmatmul.mubr.bf16.vlgmr.msra.gmra.mxu1 %v569_v18 }
 0x2b2   :  { %v675_v19 = vpop.f32.mrf.mxu1 }
 0x2b3   :  { %v676_v23 = vadd.f32 %v757_v20, %v675_v19 }
 0x2b4   :  { %v875_v21 = vpop.f32.mrf.mxu1 }
 0x2b6   :  { %v678_v22 = vpop.f32.mrf.mxu1 }
 0x2b7   :  { %v679_v24 = vadd.f32 %v757_v20, %v678_v22 }
 0x2b8   :  { %v876_v25 = vpop.f32.mrf.mxu1 }
 0x2b9   :  { %v773_v26 = vpack.c.bf16 %v679_v24, %v676_v23 }
 0x2bb   :  { %774 = vst [vmem:[#allocation10] sm:$0xff] %v773_v26  }
 0x2bc   :  { %1033 = shalt.err (!%p1030_p10)
}
 0x2bd   :  { %703 = dma.vmem_to_hbm [thread:$0]  %s698_s29, 128, %s1162_s7, [#allocation4], %s1051_s27, %s1051_s27, %s1052_s28  }
 0x2be   :  { %1048 = dma.done.wait [#allocation4], 128  }
 0x2bf   :  { %1049 = vsyncadd [#allocation4], 4294967168 }
 0x2c0   :  { %707 = vsyncpa [#allocation3], 1 }
 0x2c1   :  { %708 = vsyncpa [#allocation6], 1 }
 0x2c2   :  { %709 = vsyncpa [#allocation9], 1 }
 0x2c3   :  { %710 = vsyncpa [#allocation4], 1 }

</bundles_post_ra>
